<compile_context>
chip_gen: v5e
topology: v5e:2x2
jax: 0.10.0
libtpu: 0.0.40
codegen_flags: <defaults>
</compile_context>

<pallas_src>
import functools

import numpy as np
import jax
import jax.numpy as jnp
from jax.experimental import pallas as pl
from jax.experimental.pallas import tpu as pltpu


def _round_up(x, m):
    return ((x + m - 1) // m) * m


def _cdiv(a, b):
    return -(-a // b)


def _make_decoder_kernel(C, L8, Kq, hop, Q, d, J, t_pad, n_front, n_back,
                         use_mxu):
    """tanh(ConvTranspose1d) tile kernel.

    x_ref : (b_blk, C, L8)  f32  native NCL tile (no wrapper transpose)
    w_ref : (C, Kq)         f32  taps, left-padded by r=(-pad)%hop
    o_ref : (b_blk, t_pad)  f32  lane-dense output tile (pad crop folded in)
    """

    def kernel(x_ref, w_ref, o_ref):
        b_blk = x_ref.shape[0]
        x = x_ref[...]                        # (b_blk, C, L8)
        w = w_ref[...]                        # (C, Kq)

        # ---- frames[b, l, k] = sum_c x[b, c, l] * w[c, k] ------------------
        if use_mxu:
            # Transpose the (C, L8) tiles in-kernel (XLU, otherwise idle) and
            # run one MXU matmul with M = b_blk*L8 rows, f32 accumulation.
            xt = jnp.swapaxes(x, 1, 2)                       # (b_blk, L8, C)
            x2 = xt.reshape(b_blk * L8, C)                   # L8 % 8 == 0
            fr = jnp.dot(x2, w, preferred_element_type=jnp.float32)
            frames = fr.reshape(b_blk, L8, Kq)
        else:
            # Shallow contraction: C broadcast multiply-adds on the VPU.
            frames = x[:, 0, :, None] * w[0][None, None, :]
            for c in range(1, C):
                frames = frames + x[:, c, :, None] * w[c][None, None, :]

        # ---- polyphase overlap-add, accumulated in registers ---------------
        #   out[b, j*hop + p] = sum_q frames[b, j + d - q, q*hop + p]
        parts = []
        if n_front:
            parts.append(jnp.zeros((b_blk, n_front, Kq), jnp.float32))
        parts.append(frames)
        if n_back:
            parts.append(jnp.zeros((b_blk, n_back, Kq), jnp.float32))
        frames_z = parts[0] if len(parts) == 1 else jnp.concatenate(parts,
                                                                    axis=1)

        acc = None
        for q in range(Q):                 # Q wide adds, Q = ceil((K+r)/hop)
            row0 = n_front + d - q
            term = frames_z[:, row0:row0 + J, q * hop:(q + 1) * hop]
            acc = term if acc is None else acc + term       # (b_blk, J, hop)

        # ---- flatten to time + f32 tanh + single lane-dense store ----------
        if t_pad % hop == 0:
            j_pad = t_pad // hop
            if j_pad > J:
                acc = jnp.concatenate(
                    [acc, jnp.zeros((b_blk, j_pad - J, hop), jnp.float32)],
                    axis=1)
            flat = acc.reshape(b_blk, t_pad)
        else:
            flat = acc.reshape(b_blk, J * hop)
            if t_pad > J * hop:
                flat = jnp.concatenate(
                    [flat, jnp.zeros((b_blk, t_pad - J * hop), jnp.float32)],
                    axis=1)

        o_ref[...] = jnp.tanh(flat).astype(o_ref.dtype)

    return kernel


@functools.partial(jax.jit, static_argnames=("hop", "pad", "out_len"))
def conv_decoder_forward(x_coeff, weight, *, hop, pad, out_len):
    """Pallas equivalent of ConvDecoder.forward(x_coeff, use_sorting).

    x_coeff : (B, C, L) float32  (PyTorch NCL layout)
    weight  : (C, 1, K) float32  (PyTorch ConvTranspose1d weight)
    returns : (B, out_len) float32 == tanh(conv_transpose1d(x_coeff))[:, 0, :]
    """
    B, C, L = x_coeff.shape
    K = weight.shape[2]

    # ---- static geometry ----------------------------------------------------
    r = (-pad) % hop                   # zeros prepended to taps: folds the
    d = (pad + r) // hop               # `padding` crop into frame placement
    Q = _cdiv(K + r, hop)              # polyphase depth
    Kq = Q * hop                       # padded tap count (NOT padded to 128)
    L8 = _round_up(L, 8)               # frame count padded to a sublane tile
    J = _cdiv(out_len, hop)            # hop-blocks covering the output
    t_pad = _round_up(J * hop, 128)    # lane-dense output tile width
    n_front = max(0, Q - 1 - d)
    n_back = max(0, J + d - L8)
    use_mxu = C > 32

    # ---- generation-aware batch tiling --------------------------------------
    try:
        info = pltpu.get_tpu_info()
        vmem_cap = int(getattr(info, "vmem_capacity_bytes", 64 * 1024 * 1024))
    except Exception:
        vmem_cap = 64 * 1024 * 1024    # v7x-safe default

    kq_lane = _round_up(Kq, 128)

    def _block_bytes(bb):
        return (2 * bb * C * L8 * 4           # x tile (double buffered)
                + 2 * C * kq_lane * 4         # weight
                + 2 * bb * t_pad * 4          # output tile (double buffered)
                + 4 * bb * L8 * kq_lane * 4   # frames value + relayout temps
                + 2 * bb * t_pad * 4)         # overlap-add / tanh values

    rows_target = 512                 # M target (multiple of 256 and 128)
    b_blk = max(1, min(B, max(1, rows_target // L8)))
    if _cdiv(B, b_blk) < 2 and B >= 2:
        b_blk = _cdiv(B, 2)           # >= 2 grid steps (megacore / pipelining)
    budget = (2 * vmem_cap) // 5
    while b_blk > 1 and _block_bytes(b_blk) > budget:
        b_blk = (b_blk + 1) // 2
    n_tiles = _cdiv(B, b_blk)
    b_padded = n_tiles * b_blk

    vmem_limit = int(min(max(3 * _block_bytes(b_blk), 4 * 1024 * 1024),
                         (9 * vmem_cap) // 10))

    # ---- cheap wrapper glue (no transpose of x; pads only when needed) ------
    x_in = x_coeff
    if b_padded != B or L8 != L:
        x_in = jnp.pad(x_in, ((0, b_padded - B), (0, 0), (0, L8 - L)))
    w2 = weight[:, 0, :]
    if r or Kq != K + r:
        w2 = jnp.pad(w2, ((0, 0), (r, Kq - K - r)))

    kernel = _make_decoder_kernel(C, L8, Kq, hop, Q, d, J, t_pad,
                                  n_front, n_back, use_mxu)

    out = pl.pallas_call(
        kernel,
        out_shape=jax.ShapeDtypeStruct((n_tiles, b_blk, t_pad), jnp.float32),
        grid_spec=pltpu.PrefetchScalarGridSpec(
            num_scalar_prefetch=0,
            grid=(n_tiles,),
            in_specs=[
                pl.BlockSpec((b_blk, C, L8), lambda i: (i, 0, 0)),
                pl.BlockSpec((C, Kq), lambda i: (0, 0)),
            ],
            out_specs=pl.BlockSpec((None, b_blk, t_pad), lambda i: (i, 0, 0)),
        ),
        compiler_params=pltpu.CompilerParams(
            dimension_semantics=("parallel",),
            vmem_limit_bytes=vmem_limit,
        ),
    )(x_in, w2)

    return out.reshape(n_tiles * b_blk, t_pad)[:B, :out_len]


def _reference_numpy(x_coeff, weight, hop, pad, out_len):
    """Pure numpy ConvTranspose1d(out_channels=1) + tanh reference."""
    x = np.asarray(x_coeff)
    w = np.asarray(weight)[:, 0, :]
    B, C, L = x.shape
    K = w.shape[1]
    full = np.zeros((B, (L - 1) * hop + K), dtype=np.float64)
    for b in range(B):
        for l in range(L):
            full[b, l * hop:l * hop + K] += x[b, :, l] @ w
    return np.tanh(full[:, pad:pad + out_len]).astype(np.float32)


def _run_case(B, ft_size, kernel_size, hop, fs, d_p_length, tol):
    # Geometry exactly as ConvDecoder.__init__ computes it.
    output_size = fs * d_p_length
    input_size = int(np.ceil(output_size / hop))
    pad = int(((input_size - 1) * hop + kernel_size - output_size) / 2)
    conv_out_len = (input_size - 1) * hop + kernel_size - 2 * pad

    key = jax.random.PRNGKey(0)
    kx, kw = jax.random.split(key)
    x_coeff = jax.random.normal(kx, (B, ft_size, input_size),
                                dtype=jnp.float32)
    weight = jax.random.normal(kw, (ft_size, 1, kernel_size),
                               dtype=jnp.float32) * 0.1

    out = conv_decoder_forward(x_coeff, weight, hop=hop, pad=pad,
                               out_len=conv_out_len)
    out = jax.block_until_ready(out)
    assert out.shape == (B, conv_out_len), out.shape

    ref = _reference_numpy(x_coeff, weight, hop, pad, conv_out_len)
    np.testing.assert_allclose(np.asarray(out), ref, rtol=tol, atol=tol)


if __name__ == "__main__":
    # Small config consistent with the module's __init__ constraints:
    #   ft_size = kernel_size = 8, hop = 4, fs = 16, d_p_length = 2
    #   -> output_size = 32, input_size = 8, pad = 2.
    # C = 8 exercises the VPU (shallow-contraction) path.
    _run_case(B=2, ft_size=8, kernel_size=8, hop=4, fs=16, d_p_length=2,
              tol=1e-5)

    # Wider-channel config (C = 128) exercises the MXU frame-matmul path.
    _run_case(B=4, ft_size=128, kernel_size=16, hop=8, fs=32, d_p_length=2,
              tol=1e-4)

    print("KERNEL_OK")
</pallas_src>

<mosaic_0001>
module attributes {stable_mosaic.version = 11 : i64} {
  func.func @kernel(%arg0: i32, %arg1: memref<1x8x8xf32, #tpu.memory_space<vmem>>, %arg2: memref<8x12xf32, #tpu.memory_space<vmem>>, %arg3: memref<1x1x128xf32, #tpu.memory_space<vmem>>) attributes {dimension_semantics = [#tpu.dimension_semantics<parallel>], iteration_bounds = array<i64: 2>, scalar_prefetch = 0 : i64, scratch_operands = 0 : i64, tpu.core_type = #tpu.core_type<tc>, window_params = [{transform_indices = @transform_0, window_bounds = array<i64: 1, 8, 8>}, {pipeline_mode = #tpu.pipeline_mode<synchronous>, transform_indices = @transform_1, window_bounds = array<i64: 8, 12>}, {transform_indices = @transform_2, window_bounds = array<i64: 1, 1, 128>}]} {
    %c0 = arith.constant 0 : index
    %c0_0 = arith.constant 0 : index
    %c0_1 = arith.constant 0 : index
    %0 = vector.load %arg1[%c0, %c0_0, %c0_1] : memref<1x8x8xf32, #tpu.memory_space<vmem>>, vector<1x8x8xf32>
    %c0_2 = arith.constant 0 : index
    %c0_3 = arith.constant 0 : index
    %1 = vector.load %arg2[%c0_2, %c0_3] : memref<8x12xf32, #tpu.memory_space<vmem>>, vector<8x12xf32>
    %2 = vector.extract_strided_slice %0 {offsets = [0, 0, 0], sizes = [1, 1, 8], strides = [1, 1, 1]} : vector<1x8x8xf32> to vector<1x1x8xf32>
    %3 = vector.shape_cast %2 : vector<1x1x8xf32> to vector<1x8xf32>
    %4 = vector.shape_cast %3 : vector<1x8xf32> to vector<1x8x1xf32>
    %5 = vector.extract_strided_slice %1 {offsets = [0, 0], sizes = [1, 12], strides = [1, 1]} : vector<8x12xf32> to vector<1x12xf32>
    %6 = vector.shape_cast %5 : vector<1x12xf32> to vector<12xf32>
    %7 = vector.shape_cast %6 : vector<12xf32> to vector<1x1x12xf32>
    %8 = vector.broadcast %4 : vector<1x8x1xf32> to vector<1x8x12xf32>
    %9 = vector.broadcast %7 : vector<1x1x12xf32> to vector<1x8x12xf32>
    %10 = arith.mulf %8, %9 : vector<1x8x12xf32>
    %11 = vector.extract_strided_slice %0 {offsets = [0, 1, 0], sizes = [1, 1, 8], strides = [1, 1, 1]} : vector<1x8x8xf32> to vector<1x1x8xf32>
    %12 = vector.shape_cast %11 : vector<1x1x8xf32> to vector<1x8xf32>
    %13 = vector.shape_cast %12 : vector<1x8xf32> to vector<1x8x1xf32>
    %14 = vector.extract_strided_slice %1 {offsets = [1, 0], sizes = [1, 12], strides = [1, 1]} : vector<8x12xf32> to vector<1x12xf32>
    %15 = vector.shape_cast %14 : vector<1x12xf32> to vector<12xf32>
    %16 = vector.shape_cast %15 : vector<12xf32> to vector<1x1x12xf32>
    %17 = vector.broadcast %13 : vector<1x8x1xf32> to vector<1x8x12xf32>
    %18 = vector.broadcast %16 : vector<1x1x12xf32> to vector<1x8x12xf32>
    %19 = arith.mulf %17, %18 : vector<1x8x12xf32>
    %20 = arith.addf %10, %19 : vector<1x8x12xf32>
    %21 = vector.extract_strided_slice %0 {offsets = [0, 2, 0], sizes = [1, 1, 8], strides = [1, 1, 1]} : vector<1x8x8xf32> to vector<1x1x8xf32>
    %22 = vector.shape_cast %21 : vector<1x1x8xf32> to vector<1x8xf32>
    %23 = vector.shape_cast %22 : vector<1x8xf32> to vector<1x8x1xf32>
    %24 = vector.extract_strided_slice %1 {offsets = [2, 0], sizes = [1, 12], strides = [1, 1]} : vector<8x12xf32> to vector<1x12xf32>
    %25 = vector.shape_cast %24 : vector<1x12xf32> to vector<12xf32>
    %26 = vector.shape_cast %25 : vector<12xf32> to vector<1x1x12xf32>
    %27 = vector.broadcast %23 : vector<1x8x1xf32> to vector<1x8x12xf32>
    %28 = vector.broadcast %26 : vector<1x1x12xf32> to vector<1x8x12xf32>
    %29 = arith.mulf %27, %28 : vector<1x8x12xf32>
    %30 = arith.addf %20, %29 : vector<1x8x12xf32>
    %31 = vector.extract_strided_slice %0 {offsets = [0, 3, 0], sizes = [1, 1, 8], strides = [1, 1, 1]} : vector<1x8x8xf32> to vector<1x1x8xf32>
    %32 = vector.shape_cast %31 : vector<1x1x8xf32> to vector<1x8xf32>
    %33 = vector.shape_cast %32 : vector<1x8xf32> to vector<1x8x1xf32>
    %34 = vector.extract_strided_slice %1 {offsets = [3, 0], sizes = [1, 12], strides = [1, 1]} : vector<8x12xf32> to vector<1x12xf32>
    %35 = vector.shape_cast %34 : vector<1x12xf32> to vector<12xf32>
    %36 = vector.shape_cast %35 : vector<12xf32> to vector<1x1x12xf32>
    %37 = vector.broadcast %33 : vector<1x8x1xf32> to vector<1x8x12xf32>
    %38 = vector.broadcast %36 : vector<1x1x12xf32> to vector<1x8x12xf32>
    %39 = arith.mulf %37, %38 : vector<1x8x12xf32>
    %40 = arith.addf %30, %39 : vector<1x8x12xf32>
    %41 = vector.extract_strided_slice %0 {offsets = [0, 4, 0], sizes = [1, 1, 8], strides = [1, 1, 1]} : vector<1x8x8xf32> to vector<1x1x8xf32>
    %42 = vector.shape_cast %41 : vector<1x1x8xf32> to vector<1x8xf32>
    %43 = vector.shape_cast %42 : vector<1x8xf32> to vector<1x8x1xf32>
    %44 = vector.extract_strided_slice %1 {offsets = [4, 0], sizes = [1, 12], strides = [1, 1]} : vector<8x12xf32> to vector<1x12xf32>
    %45 = vector.shape_cast %44 : vector<1x12xf32> to vector<12xf32>
    %46 = vector.shape_cast %45 : vector<12xf32> to vector<1x1x12xf32>
    %47 = vector.broadcast %43 : vector<1x8x1xf32> to vector<1x8x12xf32>
    %48 = vector.broadcast %46 : vector<1x1x12xf32> to vector<1x8x12xf32>
    %49 = arith.mulf %47, %48 : vector<1x8x12xf32>
    %50 = arith.addf %40, %49 : vector<1x8x12xf32>
    %51 = vector.extract_strided_slice %0 {offsets = [0, 5, 0], sizes = [1, 1, 8], strides = [1, 1, 1]} : vector<1x8x8xf32> to vector<1x1x8xf32>
    %52 = vector.shape_cast %51 : vector<1x1x8xf32> to vector<1x8xf32>
    %53 = vector.shape_cast %52 : vector<1x8xf32> to vector<1x8x1xf32>
    %54 = vector.extract_strided_slice %1 {offsets = [5, 0], sizes = [1, 12], strides = [1, 1]} : vector<8x12xf32> to vector<1x12xf32>
    %55 = vector.shape_cast %54 : vector<1x12xf32> to vector<12xf32>
    %56 = vector.shape_cast %55 : vector<12xf32> to vector<1x1x12xf32>
    %57 = vector.broadcast %53 : vector<1x8x1xf32> to vector<1x8x12xf32>
    %58 = vector.broadcast %56 : vector<1x1x12xf32> to vector<1x8x12xf32>
    %59 = arith.mulf %57, %58 : vector<1x8x12xf32>
    %60 = arith.addf %50, %59 : vector<1x8x12xf32>
    %61 = vector.extract_strided_slice %0 {offsets = [0, 6, 0], sizes = [1, 1, 8], strides = [1, 1, 1]} : vector<1x8x8xf32> to vector<1x1x8xf32>
    %62 = vector.shape_cast %61 : vector<1x1x8xf32> to vector<1x8xf32>
    %63 = vector.shape_cast %62 : vector<1x8xf32> to vector<1x8x1xf32>
    %64 = vector.extract_strided_slice %1 {offsets = [6, 0], sizes = [1, 12], strides = [1, 1]} : vector<8x12xf32> to vector<1x12xf32>
    %65 = vector.shape_cast %64 : vector<1x12xf32> to vector<12xf32>
    %66 = vector.shape_cast %65 : vector<12xf32> to vector<1x1x12xf32>
    %67 = vector.broadcast %63 : vector<1x8x1xf32> to vector<1x8x12xf32>
    %68 = vector.broadcast %66 : vector<1x1x12xf32> to vector<1x8x12xf32>
    %69 = arith.mulf %67, %68 : vector<1x8x12xf32>
    %70 = arith.addf %60, %69 : vector<1x8x12xf32>
    %71 = vector.extract_strided_slice %0 {offsets = [0, 7, 0], sizes = [1, 1, 8], strides = [1, 1, 1]} : vector<1x8x8xf32> to vector<1x1x8xf32>
    %72 = vector.shape_cast %71 : vector<1x1x8xf32> to vector<1x8xf32>
    %73 = vector.shape_cast %72 : vector<1x8xf32> to vector<1x8x1xf32>
    %74 = vector.extract_strided_slice %1 {offsets = [7, 0], sizes = [1, 12], strides = [1, 1]} : vector<8x12xf32> to vector<1x12xf32>
    %75 = vector.shape_cast %74 : vector<1x12xf32> to vector<12xf32>
    %76 = vector.shape_cast %75 : vector<12xf32> to vector<1x1x12xf32>
    %77 = vector.broadcast %73 : vector<1x8x1xf32> to vector<1x8x12xf32>
    %78 = vector.broadcast %76 : vector<1x1x12xf32> to vector<1x8x12xf32>
    %79 = arith.mulf %77, %78 : vector<1x8x12xf32>
    %80 = arith.addf %70, %79 : vector<1x8x12xf32>
    %cst = arith.constant 0.000000e+00 : f32
    %81 = vector.broadcast %cst : f32 to vector<1x1x12xf32>
    %cst_4 = arith.constant 0.000000e+00 : f32
    %82 = vector.broadcast %cst_4 : f32 to vector<1x1x12xf32>
    %83 = tpu.concatenate %81, %80, %82 in 1 : vector<1x1x12xf32>, vector<1x8x12xf32>, vector<1x1x12xf32> -> vector<1x10x12xf32>
    %84 = vector.extract_strided_slice %83 {offsets = [0, 2, 0], sizes = [1, 8, 4], strides = [1, 1, 1]} : vector<1x10x12xf32> to vector<1x8x4xf32>
    %85 = vector.extract_strided_slice %83 {offsets = [0, 1, 4], sizes = [1, 8, 4], strides = [1, 1, 1]} : vector<1x10x12xf32> to vector<1x8x4xf32>
    %86 = arith.addf %84, %85 : vector<1x8x4xf32>
    %87 = vector.extract_strided_slice %83 {offsets = [0, 0, 8], sizes = [1, 8, 4], strides = [1, 1, 1]} : vector<1x10x12xf32> to vector<1x8x4xf32>
    %88 = arith.addf %86, %87 : vector<1x8x4xf32>
    %cst_5 = arith.constant 0.000000e+00 : f32
    %89 = vector.broadcast %cst_5 : f32 to vector<1x24x4xf32>
    %90 = tpu.concatenate %88, %89 in 1 : vector<1x8x4xf32>, vector<1x24x4xf32> -> vector<1x32x4xf32>
    %91 = vector.shape_cast %90 : vector<1x32x4xf32> to vector<1x128xf32>
    %92 = math.tanh %91 : vector<1x128xf32>
    %c0_6 = arith.constant 0 : index
    %c0_7 = arith.constant 0 : index
    %c0_8 = arith.constant 0 : index
    %93 = vector.load %arg3[%c0_6, %c0_7, %c0_8] : memref<1x1x128xf32, #tpu.memory_space<vmem>>, vector<1x1x128xf32>
    %94 = vector.shape_cast %93 : vector<1x1x128xf32> to vector<1x128xf32>
    %95 = vector.shape_cast %92 : vector<1x128xf32> to vector<1x1x128xf32>
    tpu.vector_store %arg3[%c0_6, %c0_7, %c0_8], %95 {strides = array<i32>} : memref<1x1x128xf32, #tpu.memory_space<vmem>>, vector<1x1x128xf32>,
    return
  }
  func.func @transform_0(%arg0: i32) -> (i32, i32, i32) {
    %c0_i32 = arith.constant 0 : i32
    %c0_i32_0 = arith.constant 0 : i32
    %c0_i32_1 = arith.constant 0 : i32
    return %arg0, %c0_i32, %c0_i32_0 : i32, i32, i32
  }
  func.func @transform_1(%arg0: i32) -> (i32, i32) {
    %c0_i32 = arith.constant 0 : i32
    %c0_i32_0 = arith.constant 0 : i32
    %c0_i32_1 = arith.constant 0 : i32
    return %c0_i32, %c0_i32_0 : i32, i32
  }
  func.func @transform_2(%arg0: i32) -> (i32, i32, i32) {
    %c0_i32 = arith.constant 0 : i32
    %c0_i32_0 = arith.constant 0 : i32
    %c0_i32_1 = arith.constant 0 : i32
    return %arg0, %c0_i32, %c0_i32_0 : i32, i32, i32
  }
}

</mosaic_0001>

<bundles_post_ra>
// kernel: conv_decoder_forward.1
= control target key start
LH: loop header
LB: loop body
LE: loop exit
PB: predicated region body
PF: predicated region fallthrough
CT: control target
= control target key end

     0   :  { %7 = vsyncpa [#allocation3], 0  ;;  %s922_s0 = inlined_call_operand.vmem [shape: f32[2,8,8], index: 0, kind: input, shape index: {}]   ;;  %s923_s1 = inlined_call_operand.vmem [shape: f32[8,12], index: 1, kind: input, shape index: {}]   ;;  %s924_s2 = inlined_call_operand.hbm [shape: f32[2,1,128], index: 2, kind: output, shape index: {}]  }
   0x1   :  { %9 = vsyncpa [#allocation3 + $0x1], 0  ;;  %s765_s9 = smov 0   ;;  %s767_s10 = smov 0  }
   0x2   :  { %s769_s11 = smov 0   ;;  %s771_s12 = smov 0  }
   0x3 LB: > { %s786_s13 = sadd.s32 4294967295, %s714_s12   ;;  %s567_s14 = sadd.s32 4294967294, %s714_s12   ;;  %s714_s12 = sphi %s771_s12, %s930_s12   ;;  %s710_s11 = sphi %s769_s11, %s929_s11   ;;  %s706_s10 = sphi %s767_s10, %s928_s10   ;;  %s702_s9 = sphi %s765_s9, %s927_s9  }
   0x4   : > { %s790_s15 = sadd.s32 1, %s714_s12   ;;  %s69_s16 = sadd.s32 1, %s710_s11 }
   0x5   : > { %s66_s17 = ssub.s32 %s714_s12, %s790_s15  ;;  %p79_p0 = scmp.ne.s32.totalorder %s710_s11, %s706_s10 }
   0x6   : > { %p67_p1 = scmp.eq.s32.totalorder %s66_s17, 0  ;;  %p80_p2 = scmp.eq.s32.totalorder %s786_s13, 1 }
   0x7   : > { %p85_p3 = scmp.ne.s32.totalorder %s706_s10, %s702_s9  ;;  %p86_p4 = scmp.eq.s32.totalorder %s567_s14, 1 }
   0x8   : > { %s801_s18 = scalar_select %p67_p1, %s710_s11, %s69_s16  }
   0x9   : > { %p803_p5 = por %p80_p2, %p79_p0  ;;  %p807_p6 = por %p86_p4, %p85_p3 }
   0xa   : > { %p570_p7 = scmp.ge.s32.totalorder %s714_s12, 1  ;;  %p114_p8 = scmp.lt.s32.totalorder %s714_s12, 3 }
   0xc   : > { %p115_p9 = pnand %p570_p7, %p114_p8 }
   0xd   : > { %p134_p10 = scmp.lt.s32.totalorder (!%p115_p9), %s786_s13, 1  ;;  %s719_s28 = smov (!%p115_p9), 120  }
   0xe   : > { %118 = sbr.rel (%p115_p9) target bundleno = 467 (0x1d3), region = 28  ;;  %s720_s29 = smov (!%p115_p9), 124  }
   0xf   : > { %s721_s30 = smov (!%p115_p9), 40   ;;  %s722_s3 = smov (!%p115_p9), 32  }
  0x10   : > { %s723_s4 = smov (!%p115_p9), 36   ;;  %s724_s5 = smov (!%p115_p9), 52  }
  0x11   : > { %s725_s6 = smov (!%p115_p9), 44   ;;  %s726_s7 = smov (!%p115_p9), 48  }
  0x12   : > { %s727_s8 = smov (!%p115_p9), 64   ;;  %s728_s14 = smov (!%p115_p9), 56  }
  0x13   : > { %v141_v0 = vlaneseq  ;;  %s135_s21 = scalar_select %p134_p10, %s786_s13, 1  ;;  %v139_v13 = vld [vmem:[%s923_s1] sm:$0xff]  ;;  %v716_v33 = vmov 1983009808   ;;  %v717_v46 = vmov 0.0   ;;  %vm222_vm0 = vcmask 1040384  }
  0x14   : > { %v147_v15 = vperm.slane %v139_v13, 0  ;;  %v156_v16 = vperm.slane %v139_v13, 1  ;;  %v166_v17 = vperm.slane %v139_v13, 2  ;;  %v176_v21 = vperm.slane %v139_v13, 3  ;;  %s729_s16 = smov 60   ;;  %s730_s17 = smov 76  }
  0x15   : > { %v142_v1 = vshrl.u32 %v141_v0, 7  ;;  %s571_s22 = sshll.u32 %s135_s21, 3  ;;  %v186_v23 = vperm.slane %v139_v13, 4  ;;  %v196_v26 = vperm.slane %v139_v13, 5  ;;  %v206_v32 = vperm.slane %v139_v13, 6  ;;  %s731_s21 = smov 68  }
  0x16   : > { %s137_s25 = scalar_lea.vmem %s922_s0, %s571_s22  ;;  %v255_v34 = vunpack.c.l.s4 %v716_v33  ;;  %v216_v37 = vperm.slane %v139_v13, 7  ;;  %v718_v49 = vmov 1934713408   ;;  %vm252_vm1 = vcmask 1047556   ;;  %s732_s22 = smov 72  }
  0x17   : > { %648 = vset.pattern.permute.xlu1 %v142_v1  ;;  %647 = vset.pattern.permute.xlu0 %v142_v1  ;;  %v138_v2 = vld [vmem:[%s137_s25] sm:$0xff]  ;;  %v265_v50 = vunpack.c.l.s4 %v718_v49  ;;  %s733_s23 = smov 88   ;;  %s734_s24 = smov 80   ;;  %vm246_vm2 = vcmask 1045504   ;;  %vm435_vm3 = vcmask 31744   ;;  %vm437_vm4 = vcmask 64512  }
  0x18   : > { %649 = vset.pattern.permute.xlu2 %v142_v1  ;;  %v159_v3 = vperm.slane %v138_v2, 2  ;;  %v140_v4 = vperm.slane %v138_v2, 0  ;;  %v179_v5 = vperm.slane %v138_v2, 4  ;;  %v169_v6 = vperm.slane %v138_v2, 3  ;;  %s735_s25 = smov 84   ;;  %s736_s26 = smov 4  }
  0x19   : > { %v149_v7 = vperm.slane %v138_v2, 1  ;;  %v189_v8 = vperm.slane %v138_v2, 5  ;;  %v209_v9 = vperm.slane %v138_v2, 7  ;;  %v199_v10 = vperm.slane %v138_v2, 6  ;;  %s737_s27 = smov 8  }
  0x1a   : > { %v821_v42 = vunpack.c.0.s8 %v255_v34  ;;  %v826_v58 = vunpack.c.0.s8 %v265_v50  ;;  %vm439_vm5 = vcmask 97280   ;;  %vm441_vm6 = vcmask 130048  }
  0x1b   : > { %vm443_vm7 = vcmask 162816   ;;  %vm445_vm8 = vcmask 195584   ;;  %vm447_vm9 = vcmask 228352   ;;  %vm449_vm10 = vcmask 261120  }
  0x1c   : > { %v294_v47 = vperm.slane %v717_v46, %v821_v42  ;;  %vm451_vm11 = vcmask 293888   ;;  %vm453_vm12 = vcmask 326656   ;;  %vm455_vm13 = vcmask 359424  }
  0x1d   : > { %vm457_vm14 = vcmask 392192   ;;  %vm459_vm15 = vcmask 424960  }
  0x1e   : > { %v299_v53 = vrot.slane %v294_v47, 4  ;;  %v835_v61 = vperm.slane %v294_v47, %v826_v58 }
  0x1f   : > { %164 = vperm.xlu1 %648, %v159_v3   ;;  %145 = vperm.xlu0 %647, %v140_v4  }
  0x20   : > { %184 = vperm.xlu2 %649, %v179_v5   ;;  %v300_v59 = vsel %vm252_vm1, 0.0, %v299_v53  ;;  %v319_v62 = vrot.slane %v835_v61, 4 }
  0x21   : > { %v831_v60 = vperm.slane %v300_v59, %v826_v58 }
  0x22   : > { %v841_v0 = vsel %vm252_vm1, 0.0, %v319_v62 }
  0x23   : > { %v321_v63 = vrot.slane %v831_v60, 4 }
  0x25   : > { %v846_v1 = vsel %vm252_vm1, 0.0, %v321_v63 }
  0x27   : > { %174 = vperm.xlu1 %648, %v169_v6   ;;  %154 = vperm.xlu0 %647, %v149_v7  }
  0x28   : > { %194 = vperm.xlu2 %649, %v189_v8  }
  0x2f   : > { %214 = vperm.xlu1 %648, %v209_v9   ;;  %204 = vperm.xlu0 %647, %v199_v10  }
  0x7a   : > { %v185_v14 = vpop.permute.xlu2 %184 }
  0x7b   : > { %v187_v30 = vmul.f32 %v186_v23, %v185_v14 }
  0x82   : > { %v195_v29 = vpop.permute.xlu2 %194 }
  0x83   : > { %v197_v36 = vmul.f32 %v196_v26, %v195_v29 }
  0x91   : > { %v165_v11 = vpop.permute.xlu1 %164  ;;  %v146_v12 = vpop.permute.xlu0 %145 }
  0x92   : > { %v148_v20 = vmul.f32 %v147_v15, %v146_v12  ;;  %v167_v24 = vmul.f32 %v166_v17, %v165_v11 }
  0x99   : > { %v175_v18 = vpop.permute.xlu1 %174  ;;  %v155_v19 = vpop.permute.xlu0 %154 }
  0x9a   : > { %v157_v22 = vmul.f32 %v156_v16, %v155_v19  ;;  %v177_v27 = vmul.f32 %v176_v21, %v175_v18 }
  0x9c   : > { %v158_v25 = vadd.f32 %v157_v22, %v148_v20 }
  0x9e   : > { %v168_v28 = vadd.f32 %v167_v24, %v158_v25 }
  0xa0   : > { %v178_v31 = vadd.f32 %v177_v27, %v168_v28 }
  0xa1   : > { %v205_v35 = vpop.permute.xlu0 %204  ;;  %v215_v39 = vpop.permute.xlu1 %214 }
  0xa2   : > { %v188_v38 = vadd.f32 %v187_v30, %v178_v31  ;;  %v207_v41 = vmul.f32 %v206_v32, %v205_v35  ;;  %v217_v43 = vmul.f32 %v216_v37, %v215_v39 }
  0xa4   : > { %v198_v40 = vadd.f32 %v197_v36, %v188_v38 }
  0xa6   : > { %v208_v44 = vadd.f32 %v207_v41, %v198_v40 }
  0xa8   : > { %v218_v45 = vadd.f32 %v217_v43, %v208_v44 }
  0xaa   : > { %v220_v48 = vrot.slane %v218_v45, 7 }
  0xac   : > { %v224_v51 = vsel %vm222_vm0, %v220_v48, 0.0  ;;  %v223_v52 = vsel %vm222_vm0, 0.0, %v220_v48 }
  0xad   : > { %v238_v54 = vrot.slane %v223_v52, 6  ;;  %v227_v55 = vrot.slane %v223_v52, 7  ;;  %v228_v56 = vrot.slane %v224_v51, 7 }
  0xaf   : > { %239 = vrot.lane.b32.xlu1 %v238_v54, %s719_s28  ;;  %230 = vrot.lane.b32.xlu2 %v227_v55, %s720_s29  ;;  %v229_v57 = vsel %vm222_vm0, %v227_v55, %v228_v56  ;;  %vm461_vm0 = vcmask 457728  }
  0xb0   : > { %232 = vrot.lane.b32.xlu0 %v229_v57, %s720_s29 }
  0xb7   : > { %364 = vrot.lane.b32.xlu2 %v831_v60, %s721_s30  ;;  %360 = vrot.lane.b32.xlu1 %v841_v0, %s723_s4  ;;  %s738_s30 = smov 12   ;;  %s740_s4 = smov 20  }
  0xb8   : > { %356 = vrot.lane.b32.xlu0 %v835_v61, %s722_s3  ;;  %s739_s3 = smov 16  }
  0xbf   : > { %376 = vrot.lane.b32.xlu2 %v841_v0, %s724_s5  ;;  %372 = vrot.lane.b32.xlu1 %v835_v61, %s726_s7  ;;  %s741_s5 = smov 24   ;;  %s743_s7 = smov 92  }
  0xc0   : > { %368 = vrot.lane.b32.xlu0 %v846_v1, %s725_s6  ;;  %s742_s6 = smov 28  }
  0xc7   : > { %387 = vrot.lane.b32.xlu2 %v835_v61, %s727_s8  ;;  %384 = vrot.lane.b32.xlu1 %v846_v1, %s729_s16  ;;  %s744_s8 = smov 96   ;;  %s746_s16 = smov 100  }
  0xc8   : > { %380 = vrot.lane.b32.xlu0 %v831_v60, %s728_s14  ;;  %s745_s14 = smov 104  }
  0xcf   : > { %396 = vrot.lane.b32.xlu2 %v846_v1, %s730_s17  ;;  %393 = vrot.lane.b32.xlu1 %v831_v60, %s732_s22  ;;  %s747_s17 = smov 108   ;;  %s749_s22 = smov 112  }
  0xd0   : > { %390 = vrot.lane.b32.xlu0 %v841_v0, %s731_s21  ;;  %s748_s21 = smov 116  }
  0xd7   : > { %405 = vrot.lane.b32.xlu2 %v831_v60, %s733_s23  ;;  %402 = vrot.lane.b32.xlu1 %v841_v0, %s735_s25 }
  0xd8   : > { %399 = vrot.lane.b32.xlu0 %v835_v61, %s734_s24  ;;  %s508_s24 = scalar_lea.hbm %s924_s2, %s786_s13  ;;  %s672_s13 = scalar_lea.hbm %s924_s2, 2 }
 0x109   : > { %v231_v2 = vpop.permute.xlu2 %230 }
 0x10a   : > { %v236_v3 = vadd.f32 %v231_v2, %v223_v52 }
 0x111   : > { %v365_v32 = vpop.permute.xlu2 %364 }
 0x119   : > { %v377_v33 = vpop.permute.xlu2 %376 }
 0x121   : > { %v240_v4 = vpop.permute.xlu1 %239  ;;  %v388_v36 = vpop.permute.xlu2 %387 }
 0x122   : > { %v233_v5 = vpop.permute.xlu0 %232  ;;  %v242_v6 = vadd.f32 %v240_v4, %v236_v3 }
 0x123   : > { %v237_v7 = vadd.f32 %v233_v5, %v224_v51 }
 0x124   : > { %v247_v9 = vrot.slane %v242_v6, 2 }
 0x125   : > { %v243_v8 = vadd.f32 %v240_v4, %v237_v7 }
 0x127   : > { %v248_v10 = vrot.slane %v243_v8, 2 }
 0x129   : > { %v249_v11 = vsel %vm246_vm2, %v247_v9, %v248_v10  ;;  %v361_v35 = vpop.permute.xlu1 %360  ;;  %v397_v39 = vpop.permute.xlu2 %396  ;;  %vm465_vm2 = vcmask 523264  }
 0x12a   : > { %v251_v12 = vrot.slane %v249_v11, 4  ;;  %v257_v13 = vperm.slane %v249_v11, %v821_v42  ;;  %v357_v34 = vpop.permute.xlu0 %356 }
 0x12c   : > { %v861_v14 = vperm.slane %v257_v13, %v826_v58  ;;  %v262_v15 = vrot.slane %v257_v13, 4  ;;  %v253_v16 = vsel %vm252_vm1, 0.0, %v251_v12 }
 0x12d   : > { %v261_v17 = vperm.slane %v253_v16, %v821_v42 }
 0x12e   : > { %v282_v18 = vrot.slane %v861_v14, 4  ;;  %v263_v19 = vsel %vm252_vm1, 0.0, %v262_v15 }
 0x12f   : > { %v271_v20 = vperm.slane %v263_v19, %v826_v58  ;;  %v277_v22 = vperm.slane %v261_v17, %v826_v58  ;;  %v272_v24 = vrot.slane %v261_v17, 4 }
 0x130   : > { %v283_v21 = vsel %vm252_vm1, 0.0, %v282_v18 }
 0x131   : > { %328 = vrot.lane.b32.xlu2 %v283_v21, %s736_s26  ;;  %332 = vrot.lane.b32.xlu0 %v271_v20, %s737_s27  ;;  %v284_v23 = vrot.slane %v271_v20, 4  ;;  %v286_v26 = vrot.slane %v277_v22, 4  ;;  %v273_v27 = vsel %vm252_vm1, 0.0, %v272_v24  ;;  %v373_v38 = vpop.permute.xlu1 %372  ;;  %v886_v42 = vpop.permute.xlu2 %405  ;;  %s512_s27 = sshll.u32 %s508_s24, 4  ;;  %s513_s27 = int_to_ptr.hbm [resolvable:$true] %s512_s27 }
 0x132   : > { %v281_v29 = vperm.slane %v273_v27, %v826_v58  ;;  %v369_v37 = vpop.permute.xlu0 %368 }
 0x133   : > { %v285_v25 = vsel %vm252_vm1, 0.0, %v284_v23  ;;  %v287_v28 = vsel %vm252_vm1, 0.0, %v286_v26 }
 0x134   : > { %336 = vrot.lane.b32.xlu1 %v285_v25, %s738_s30  ;;  %v288_v30 = vrot.slane %v281_v29, 4 }
 0x136   : > { %v289_v31 = vsel %vm252_vm1, 0.0, %v288_v30  ;;  %vm463_vm1 = vcmask 490496  }
 0x139   : > { %340 = vrot.lane.b32.xlu2 %v277_v22, %s739_s3  ;;  %344 = vrot.lane.b32.xlu0 %v287_v28, %s740_s4  ;;  %v385_v41 = vpop.permute.xlu1 %384  ;;  %s666_s3 = sshra.s32 %s513_s27, 4  ;;  %s667_s3 = int_to_ptr.hbm [resolvable:$true] %s666_s3 }
 0x13a   : > { %v381_v40 = vpop.permute.xlu0 %380  ;;  %s668_s4 = scalar_lea.hbm %s667_s3, 1  ;;  %p673_p0 = scmp.lt.s32.totalorder %s667_s3, %s924_s2 }
 0x13b   : > { %p669_p11 = scmp.ne.s32.totalorder %s667_s3, %s668_s4  ;;  %p674_p1 = scmp.lt.s32.totalorder %s672_s13, %s668_s4 }
 0x13c   : > { %348 = vrot.lane.b32.xlu1 %v281_v29, %s741_s5 }
 0x13d   : > { %p670_p12 = pnand %p669_p11, %p803_p5  ;;  %p675_p2 = por %p674_p1, %p673_p0 }
 0x13f   : > { %p671_p13 = pneg %p670_p12 }
 0x141   : > { %352 = vrot.lane.b32.xlu2 %v289_v31, %s742_s6  ;;  %408 = vrot.lane.b32.xlu0 %v846_v1, %s743_s7  ;;  %v394_v44 = vpop.permute.xlu1 %393  ;;  %p676_p3 = pnand %p675_p2, %p671_p13 }
 0x142   : > { %v391_v43 = vpop.permute.xlu0 %390 }
 0x144   : > { %411 = vrot.lane.b32.xlu1 %v835_v61, %s744_s8 }
 0x149   : > { %417 = vrot.lane.b32.xlu0 %v831_v60, %s745_s14  ;;  %414 = vrot.lane.b32.xlu2 %v841_v0, %s746_s16  ;;  %v403_v47 = vpop.permute.xlu1 %402 }
 0x14a   : > { %v400_v46 = vpop.permute.xlu0 %399 }
 0x14c   : > { %420 = vrot.lane.b32.xlu1 %v846_v1, %s747_s17 }
 0x151   : > { %426 = vrot.lane.b32.xlu0 %v841_v0, %s748_s21  ;;  %423 = vrot.lane.b32.xlu2 %v835_v61, %s749_s22 }
 0x154   : > { %429 = vrot.lane.b32.xlu1 %v831_v60, %s719_s28  ;;  %s132_s28 = sand.u32 1, %s706_s10  }
 0x155   : > { %s133_s25 = scalar_lea.vmem [#allocation2], %s132_s28  ;;  %s500_s30 = scalar_lea.sflag [#allocation3], %s132_s28 }
 0x156   : > { %s510_s26 = sshll.u32 %s133_s25, 4  ;;  %s511_s26 = int_to_ptr.vmem [resolvable:$true] %s510_s26 }
 0x159   : > { %432 = vrot.lane.b32.xlu2 %v846_v1, %s720_s29 }
 0x18b   : > { %v329_v45 = vpop.permute.xlu2 %328 }
 0x18c   : > { %v436_v51 = vsel %vm435_vm3, %v861_v14, %v329_v45  ;;  %vm467_vm3 = vcmask 556032  }
 0x193   : > { %v341_v48 = vpop.permute.xlu2 %340 }
 0x19b   : > { %v353_v52 = vpop.permute.xlu2 %352 }
 0x1a3   : > { %v333_v49 = vpop.permute.xlu0 %332  ;;  %v415_v62 = vpop.permute.xlu2 %414 }
 0x1a4   : > { %v438_v53 = vsel %vm437_vm4, %v436_v51, %v333_v49  ;;  %vm469_vm4 = vcmask 588800  }
 0x1a6   : > { %v337_v50 = vpop.permute.xlu1 %336 }
 0x1a7   : > { %v440_v54 = vsel %vm439_vm5, %v438_v53, %v337_v50  ;;  %vm471_vm5 = vcmask 621568  }
 0x1a8   : > { %v442_v56 = vsel %vm441_vm6, %v440_v54, %v341_v48  ;;  %vm473_vm6 = vcmask 654336  }
 0x1ab   : > { %v345_v55 = vpop.permute.xlu0 %344  ;;  %v424_v12 = vpop.permute.xlu2 %423 }
 0x1ac   : > { %v444_v57 = vsel %vm443_vm7, %v442_v56, %v345_v55  ;;  %vm475_vm7 = vcmask 687104  }
 0x1ae   : > { %v349_v58 = vpop.permute.xlu1 %348 }
 0x1af   : > { %v446_v59 = vsel %vm445_vm8, %v444_v57, %v349_v58  ;;  %vm477_vm8 = vcmask 719872  }
 0x1b0   : > { %v448_v60 = vsel %vm447_vm9, %v446_v59, %v353_v52  ;;  %vm479_vm9 = vcmask 752640  }
 0x1b1   : > { %v450_v61 = vsel %vm449_vm10, %v448_v60, %v357_v34  ;;  %vm481_vm10 = vcmask 785408  }
 0x1b2   : > { %v452_v63 = vsel %vm451_vm11, %v450_v61, %v361_v35  ;;  %vm483_vm11 = vcmask 818176  }
 0x1b3   : > { %v454_v0 = vsel %vm453_vm12, %v452_v63, %v365_v32  ;;  %v409_v1 = vpop.permute.xlu0 %408  ;;  %vm485_vm12 = vcmask 850944   ;;  %v433_v25 = vpop.permute.xlu2 %432 }
 0x1b4   : > { %v456_v2 = vsel %vm455_vm13, %v454_v0, %v369_v37  ;;  %vm487_vm13 = vcmask 883712  }
 0x1b5   : > { %v458_v3 = vsel %vm457_vm14, %v456_v2, %v373_v38  ;;  %vm489_vm14 = vcmask 916480  }
 0x1b6   : > { %v460_v4 = vsel %vm459_vm15, %v458_v3, %v377_v33  ;;  %v412_v5 = vpop.permute.xlu1 %411  ;;  %vm491_vm15 = vcmask 949248  }
 0x1b7   : > { %v462_v6 = vsel %vm461_vm0, %v460_v4, %v381_v40  ;;  %vm493_vm0 = vcmask 982016  }
 0x1b8   : > { %v464_v7 = vsel %vm463_vm1, %v462_v6, %v385_v41  ;;  %vm495_vm1 = vcmask 1014784  }
 0x1b9   : > { %v466_v8 = vsel %vm465_vm2, %v464_v7, %v388_v36 }
 0x1ba   : > { %v468_v9 = vsel %vm467_vm3, %v466_v8, %v391_v43 }
 0x1bb   : > { %v470_v10 = vsel %vm469_vm4, %v468_v9, %v394_v44  ;;  %v418_v11 = vpop.permute.xlu0 %417 }
 0x1bc   : > { %v472_v13 = vsel %vm471_vm5, %v470_v10, %v397_v39 }
 0x1bd   : > { %v474_v14 = vsel %vm473_vm6, %v472_v13, %v400_v46 }
 0x1be   : > { %v476_v15 = vsel %vm475_vm7, %v474_v14, %v403_v47  ;;  %v421_v16 = vpop.permute.xlu1 %420 }
 0x1bf   : > { %v478_v17 = vsel %vm477_vm8, %v476_v15, %v886_v42 }
 0x1c0   : > { %v480_v18 = vsel %vm479_vm9, %v478_v17, %v409_v1 }
 0x1c1   : > { %v482_v19 = vsel %vm481_vm10, %v480_v18, %v412_v5 }
 0x1c2   : > { %v484_v20 = vsel %vm483_vm11, %v482_v19, %v415_v62 }
 0x1c3   : > { %v486_v21 = vsel %vm485_vm12, %v484_v20, %v418_v11  ;;  %v427_v22 = vpop.permute.xlu0 %426 }
 0x1c4   : > { %v488_v23 = vsel %vm487_vm13, %v486_v21, %v421_v16 }
 0x1c5   : > { %v490_v24 = vsel %vm489_vm14, %v488_v23, %v424_v12 }
 0x1c6   : > { %v492_v26 = vsel %vm491_vm15, %v490_v24, %v427_v22  ;;  %v430_v27 = vpop.permute.xlu1 %429 }
 0x1c7   : > { %v494_v28 = vsel %vm493_vm0, %v492_v26, %v430_v27 }
 0x1c8   : > { %v496_v29 = vsel %vm495_vm1, %v494_v28, %v433_v25 }
 0x1c9   : > { %650 = vtanh.f32 %v496_v29 }
 0x1cf   : > { %v651_v30 = vpop.eup %650 }
 0x1d0   : > { %498 = vst [vmem:[%s133_s25] sm:$0x1] %v651_v30 }
 0x1d1   : > { %679 = shalt.err (!%p676_p3)
}
 0x1d2   : > { %574 = dma.vmem_to_hbm [thread:$0]  (%p803_p5), %s511_s26, 16, %s513_s27, %s500_s30  }
 0x1d3 PF: > { %p580_p4 = scmp.ge.s32.totalorder %s714_s12, 2  ;;  %s524_s14 = sand.u32 1, %s702_s9  }
 0x1d4   : > { %s525_s16 = scalar_lea.sflag [#allocation3], %s524_s14 }
 0x1d5   : > { %p577_p7 = pnand %p580_p4, %p807_p6 }
 0x1d7   : > { %p578_p8 = pneg %p577_p7 }
 0x1d9   : > { %697 = dma.done.wait (%p578_p8), %s525_s16, 16  }
 0x1da   : > { %699 = vsyncadd (%p578_p8), %s525_s16, 4294967280  ;;  %p12_p9 = scmp.ge.s32.totalorder %s790_s15, 4   ;;  %s927_s9 = smov %s706_s10 }
 0x1db   : > { %s928_s10 = smov %s710_s11  ;;  %s929_s11 = smov %s801_s18 }
 0x1dc   : > { %s930_s12 = smov %s790_s15  ;;  %14 = sbr.rel (!%p12_p9) target bundleno = 3 (0x3), region = 63 }
 0x1e1   :  { %530 = vsyncpa [#allocation3], 1 }
 0x1e2   :  { %532 = vsyncpa [#allocation3 + $0x1], 1 }

</bundles_post_ra>
